<compile_context>
chip_gen: v7x
topology: tpu7x:2x2x1
jax: 0.10.0
libtpu: 0.0.40
codegen_flags: <defaults>
</compile_context>

<pallas_src>
import functools

import jax
import jax.numpy as jnp
from jax.experimental import pallas as pl
from jax.experimental.pallas import tpu as pltpu


_EPS = 1e-12  # matches torch.nn.functional.normalize default eps


def _round_up(v: int, m: int) -> int:
    return ((v + m - 1) // m) * m


def _cosine_fc_kernel(scale_ref, x_ref, w_ref, *rest,
                      normalize_x: bool, normalize_w: bool,
                      has_bias: bool, bf16_matmul: bool):
    """One (TM, TN) output tile.

    scale_ref : SMEM (1,) f32        -- scale_cls
    x_ref     : VMEM (TM, Cp) f32    -- input feature rows (zero padded)
    w_ref     : VMEM (TN, Cp) f32    -- classifier weight rows [class, chan]
    b_ref     : VMEM (1, TN) f32     -- optional bias (only if has_bias)
    o_ref     : VMEM (TM, TN) f32    -- logits tile
    """
    if has_bias:
        b_ref, o_ref = rest
    else:
        (o_ref,) = rest

    scale = scale_ref[0]
    x = x_ref[...]
    w = w_ref[...]

    scale_folded = False
    if normalize_x:
        # x / max(||x||, eps)  ==  x * rsqrt(max(sumsq, eps^2)); fold scale in.
        inv_x = jax.lax.rsqrt(
            jnp.maximum(jnp.sum(x * x, axis=1, keepdims=True), _EPS * _EPS))
        x = x * (inv_x * scale)
        scale_folded = True

    if normalize_w:
        # Per-class L2 norm == per-column norm of the transposed weight.
        inv_w = jax.lax.rsqrt(
            jnp.maximum(jnp.sum(w * w, axis=1, keepdims=True), _EPS * _EPS))
        if not scale_folded:
            inv_w = inv_w * scale
            scale_folded = True
        w = w * inv_w

    if bf16_matmul:
        x = x.astype(jnp.bfloat16)
        w = w.astype(jnp.bfloat16)

    # x:[TM,Cp] . w:[TN,Cp] contracting the channel axis -> [TM,TN] on the MXU.
    out = jax.lax.dot_general(
        x, w,
        dimension_numbers=(((1,), (1,)), ((), ())),
        preferred_element_type=jnp.float32)

    if not scale_folded:
        out = out * scale
    if has_bias:
        out = out + b_ref[...]

    o_ref[...] = out.astype(o_ref.dtype)


def _pick_blocks(B, N, C_pad, block_m, block_n):
    """Pick (TM, TN): as large as possible while the double-buffered working
    set stays under a conservative VMEM budget (v7x has only 64 MiB)."""
    auto_m = block_m is None
    auto_n = block_n is None
    if auto_m:
        block_m = min(512, _round_up(B, 8))
    if auto_n:
        block_n = min(512, _round_up(N, 128))
    block_m = max(8, _round_up(block_m, 8))
    block_n = max(128, _round_up(block_n, 128))

    budget = 40 << 20  # bytes; headroom under 64 MiB (v7x) scoped VMEM

    def footprint(bm, bn):
        # double-buffered x tile + w tile + out tile + bias row (f32)
        return 4 * (2 * bm * C_pad + 2 * bn * C_pad + 2 * bm * bn + 2 * bn)

    while footprint(block_m, block_n) > budget:
        can_m = auto_m and block_m > 8
        can_n = auto_n and block_n > 128
        if can_m and (block_m >= block_n or not can_n):
            block_m = max(8, _round_up(block_m // 2, 8))
        elif can_n:
            block_n = max(128, _round_up(block_n // 2, 128))
        else:
            break  # user-pinned tiles or C too large (see TODO above)
    return block_m, block_n


def cosine_classifier_forward(x_in, weight, scale_cls, bias=None, *,
                              normalize_x: bool = True,
                              normalize_w: bool = True,
                              bf16_matmul: bool = False,
                              block_m: int | None = None,
                              block_n: int | None = None):
    """JAX/Pallas equivalent of CosineClassifier.forward.

    x_in      : [B, C] float32
    weight    : [num_classes, num_channels] float32 (PyTorch parameter layout)
    scale_cls : [1] float32
    bias      : optional [num_classes] float32
    returns   : [B, num_classes] float32
    """
    x_in = jnp.asarray(x_in, jnp.float32)
    weight = jnp.asarray(weight, jnp.float32)
    scale_cls = jnp.asarray(scale_cls, jnp.float32).reshape((1,))

    assert x_in.ndim == 2 and weight.ndim == 2
    B, C = x_in.shape
    N, C_w = weight.shape
    assert C == C_w, "x_in.shape[1] must equal weight.shape[1] (num_channels)"

    # --- tile sizes (sublane-aligned TM, lane-dense TN, lane-dense channels) --
    C_pad = _round_up(C, 128)
    block_m, block_n = _pick_blocks(B, N, C_pad, block_m, block_n)
    B_pad = _round_up(B, block_m)
    N_pad = _round_up(N, block_n)

    def _pad2(a, rows, cols):
        if a.shape == (rows, cols):
            return a
        return jnp.pad(a, ((0, rows - a.shape[0]), (0, cols - a.shape[1])))

    x_p = _pad2(x_in, B_pad, C_pad)
    w_p = _pad2(weight, N_pad, C_pad)  # natural [class, channel] layout

    has_bias = bias is not None
    inputs = [scale_cls, x_p, w_p]
    in_specs = [
        pl.BlockSpec((1,), lambda i, j: (0,),
                     memory_space=pltpu.MemorySpace.SMEM),        # scale_cls
        pl.BlockSpec((block_m, C_pad), lambda i, j: (i, 0)),      # x rows
        pl.BlockSpec((block_n, C_pad), lambda i, j: (j, 0)),      # w rows
    ]
    if has_bias:
        b_p = _pad2(jnp.asarray(bias, jnp.float32).reshape((1, N)), 1, N_pad)
        inputs.append(b_p)
        in_specs.append(pl.BlockSpec((1, block_n), lambda i, j: (0, j)))

    grid_m = B_pad // block_m
    grid_n = N_pad // block_n
    grid = (grid_m, grid_n)

    # VMEM budget: double-buffered input tiles + output tile, with headroom.
    tile_bytes = 4 * (block_m * C_pad + block_n * C_pad
                      + block_m * block_n + block_n)
    vmem_limit = int(min(48 << 20, max(4 * tile_bytes, 16 << 20)))

    # Advisory cost hint for XLA's scheduler around the custom call.
    flops = 2 * B_pad * N_pad * C_pad
    transcendentals = 0
    if normalize_x:
        flops += 3 * B_pad * C_pad * grid_n
        transcendentals += B_pad * grid_n
    if normalize_w:
        flops += 3 * N_pad * C_pad * grid_m
        transcendentals += N_pad * grid_m
    bytes_accessed = 4 * (B_pad * C_pad * grid_n + N_pad * C_pad * grid_m
                          + B_pad * N_pad + (N_pad if has_bias else 0))
    cost = pl.CostEstimate(flops=int(flops),
                           transcendentals=int(transcendentals),
                           bytes_accessed=int(bytes_accessed))

    kernel = functools.partial(_cosine_fc_kernel,
                               normalize_x=normalize_x,
                               normalize_w=normalize_w,
                               has_bias=has_bias,
                               bf16_matmul=bf16_matmul)

    out_p = pl.pallas_call(
        kernel,
        grid=grid,
        out_shape=jax.ShapeDtypeStruct((B_pad, N_pad), jnp.float32),
        in_specs=in_specs,
        out_specs=pl.BlockSpec((block_m, block_n), lambda i, j: (i, j)),
        compiler_params=pltpu.CompilerParams(
            dimension_semantics=("parallel", "parallel"),
            vmem_limit_bytes=vmem_limit),
        cost_estimate=cost,
    )(*inputs)

    if (B_pad, N_pad) != (B, N):
        out_p = out_p[:B, :N]
    return out_p


def _reference_forward(x_in, weight, scale_cls, bias=None,
                       normalize_x=True, normalize_w=True):
    """Pure-JAX mirror of cosine_fully_connected_layer(x, W.t(), ...)."""
    eps = 1e-12
    w = weight.T  # [C, N]
    if normalize_x:
        xn = jnp.sqrt(jnp.sum(x_in * x_in, axis=1, keepdims=True))
        x_in = x_in / jnp.maximum(xn, eps)
    if normalize_w:
        wn = jnp.sqrt(jnp.sum(w * w, axis=0, keepdims=True))
        w = w / jnp.maximum(wn, eps)
    out = (x_in @ w) * scale_cls.reshape(1, -1)
    if bias is not None:
        out = out + bias.reshape(1, -1)
    return out


if __name__ == "__main__":
    # NOTE: at these demo sizes the kernel is pure launch/DMA overhead (the
    # matmul itself is a handful of MXU cycles); the tiling/padding machinery
    # is what matters at realistic classifier shapes.
    key = jax.random.PRNGKey(0)

    ok = True

    # (B, C, N, scale, has_bias, norm_x, norm_w, block_m, block_n, bf16, atol, rtol)
    configs = [
        # Module defaults: normalize both, bias=False.
        (8, 32, 16, 10.0, False, True, True, None, None, False, 1e-4, 1e-5),
        # Unaligned shapes + bias path (exercises zero padding).
        (10, 40, 20, 3.0, True, True, True, None, None, False, 1e-4, 1e-5),
        # Multi-tile grid (2x2) with forced small tiles.
        (16, 32, 256, 5.0, False, True, True, 8, 128, False, 1e-4, 1e-5),
        # normalize_x=False -> scale folded into w.
        (8, 32, 16, 2.0, False, False, True, None, None, False, 1e-4, 1e-5),
        # both normalizations off -> scale applied to the output, plus bias.
        (8, 32, 16, 2.0, True, False, False, None, None, False, 1e-4, 1e-5),
        # bf16 MXU operand path (looser tolerance).
        (16, 32, 128, 10.0, False, True, True, None, None, True, 1e-1, 2e-2),
    ]

    for (B, C, N, scale, has_bias, nx, nw, bm, bn, bf16,
         atol, rtol) in configs:
        kx, kw, kb = jax.random.split(jax.random.fold_in(key, B * 131 + N), 3)
        # Mirrors torch.FloatTensor(N, C).normal_(0, sqrt(2/C)).
        weight = jax.random.normal(kw, (N, C), jnp.float32) * jnp.sqrt(2.0 / C)
        x = jax.random.normal(kx, (B, C), jnp.float32)
        scale_cls = jnp.full((1,), scale, jnp.float32)
        bias = (jax.random.normal(kb, (N,), jnp.float32) * 0.1
                if has_bias else None)

        out = cosine_classifier_forward(
            x, weight, scale_cls, bias,
            normalize_x=nx, normalize_w=nw, bf16_matmul=bf16,
            block_m=bm, block_n=bn)
        out = jax.block_until_ready(out)
        ref = _reference_forward(x, weight, scale_cls, bias,
                                 normalize_x=nx, normalize_w=nw)

        if out.shape != (B, N) or not jnp.allclose(out, ref,
                                                   atol=atol, rtol=rtol):
            ok = False
            print(f"MISMATCH for config B={B} C={C} N={N} bias={has_bias} "
                  f"nx={nx} nw={nw} bf16={bf16}: "
                  f"max_err={float(jnp.max(jnp.abs(out - ref)))}")

    if ok:
        print("KERNEL_OK")
</pallas_src>

<mosaic_0001>
module attributes {stable_mosaic.version = 11 : i64} {
  func.func @_cosine_fc_kernel(%arg0: i32, %arg1: i32, %arg2: memref<1xf32, #tpu.memory_space<smem>>, %arg3: memref<8x128xf32, #tpu.memory_space<vmem>>, %arg4: memref<128x128xf32, #tpu.memory_space<vmem>>, %arg5: memref<8x128xf32, #tpu.memory_space<vmem>>) attributes {dimension_semantics = [#tpu.dimension_semantics<parallel>, #tpu.dimension_semantics<parallel>], iteration_bounds = array<i64: 1, 1>, scalar_prefetch = 0 : i64, scratch_operands = 0 : i64, tpu.core_type = #tpu.core_type<tc>, window_params = [{transform_indices = @transform_0, window_bounds = array<i64: 1>}, {transform_indices = @transform_1, window_bounds = array<i64: 8, 128>}, {transform_indices = @transform_2, window_bounds = array<i64: 128, 128>}, {transform_indices = @transform_3, window_bounds = array<i64: 8, 128>}]} {
    %c0 = arith.constant 0 : index
    %0 = memref.load %arg2[%c0] : memref<1xf32, #tpu.memory_space<smem>>
    %c0_0 = arith.constant 0 : index
    %c0_1 = arith.constant 0 : index
    %1 = vector.load %arg3[%c0_0, %c0_1] : memref<8x128xf32, #tpu.memory_space<vmem>>, vector<8x128xf32>
    %c0_2 = arith.constant 0 : index
    %c0_3 = arith.constant 0 : index
    %2 = vector.load %arg4[%c0_2, %c0_3] : memref<128x128xf32, #tpu.memory_space<vmem>>, vector<128x128xf32>
    %3 = arith.mulf %1, %1 : vector<8x128xf32>
    %cst = arith.constant dense<0.000000e+00> : vector<8xf32>
    %4 = vector.multi_reduction <add>, %3, %cst [1] : vector<8x128xf32> to vector<8xf32>
    %5 = vector.shape_cast %4 : vector<8xf32> to vector<8x1xf32>
    %cst_4 = arith.constant 1.000000e-24 : f32
    %6 = vector.broadcast %cst_4 : f32 to vector<8x1xf32>
    %7 = arith.maximumf %5, %6 : vector<8x1xf32>
    %8 = math.rsqrt %7 : vector<8x1xf32>
    %9 = vector.broadcast %0 : f32 to vector<8x1xf32>
    %10 = arith.mulf %8, %9 : vector<8x1xf32>
    %11 = vector.broadcast %10 : vector<8x1xf32> to vector<8x128xf32>
    %12 = arith.mulf %1, %11 : vector<8x128xf32>
    %13 = arith.mulf %2, %2 : vector<128x128xf32>
    %cst_5 = arith.constant dense<0.000000e+00> : vector<128xf32>
    %14 = vector.multi_reduction <add>, %13, %cst_5 [1] : vector<128x128xf32> to vector<128xf32>
    %15 = vector.shape_cast %14 : vector<128xf32> to vector<128x1xf32>
    %cst_6 = arith.constant 1.000000e-24 : f32
    %16 = vector.broadcast %cst_6 : f32 to vector<128x1xf32>
    %17 = arith.maximumf %15, %16 : vector<128x1xf32>
    %18 = math.rsqrt %17 : vector<128x1xf32>
    %19 = vector.broadcast %18 : vector<128x1xf32> to vector<128x128xf32>
    %20 = arith.mulf %2, %19 : vector<128x128xf32>
    %cst_7 = arith.constant dense<0.000000e+00> : vector<8x128xf32>
    %21 = tpu.matmul %12, %20, %cst_7 {dimension_numbers = #tpu.dot_dimension_numbers<[1], [1], [0], [0], [0, 0, 1, 0], [], []>} : vector<8x128xf32>, vector<128x128xf32>, vector<8x128xf32> -> vector<8x128xf32>
    %c0_8 = arith.constant 0 : index
    %c0_9 = arith.constant 0 : index
    %22 = vector.load %arg5[%c0_8, %c0_9] : memref<8x128xf32, #tpu.memory_space<vmem>>, vector<8x128xf32>
    tpu.vector_store %arg5[%c0_8, %c0_9], %21 {strides = array<i32>} : memref<8x128xf32, #tpu.memory_space<vmem>>, vector<8x128xf32>,
    return
  }
  func.func @transform_0(%arg0: i32, %arg1: i32) -> i32 {
    %c0_i32 = arith.constant 0 : i32
    %c0_i32_0 = arith.constant 0 : i32
    return %c0_i32 : i32
  }
  func.func @transform_1(%arg0: i32, %arg1: i32) -> (i32, i32) {
    %c0_i32 = arith.constant 0 : i32
    %c0_i32_0 = arith.constant 0 : i32
    return %arg0, %c0_i32 : i32, i32
  }
  func.func @transform_2(%arg0: i32, %arg1: i32) -> (i32, i32) {
    %c0_i32 = arith.constant 0 : i32
    %c0_i32_0 = arith.constant 0 : i32
    return %arg1, %c0_i32 : i32, i32
  }
  func.func @transform_3(%arg0: i32, %arg1: i32) -> (i32, i32) {
    %c0_i32 = arith.constant 0 : i32
    return %arg0, %arg1 : i32, i32
  }
}

</mosaic_0001>

<bundles_post_ra>
// kernel: tpu_custom_call.1
= control target key start
LH: loop header
LB: loop body
LE: loop exit
PB: predicated region body
PF: predicated region fallthrough
CT: control target
= control target key end

     0   :  { %9 = vsyncpa [#allocation4], 0  ;;  %s608_s0 = inlined_call_operand.<no memory space> [shape: f32[1], index: 0, kind: input, shape index: {}]   ;;  %s609_s1 = inlined_call_operand.hbm [shape: f32[8,128], index: 1, kind: input, shape index: {}]   ;;  %s610_s2 = inlined_call_operand.hbm [shape: f32[128,128], index: 2, kind: input, shape index: {}]   ;;  %s611_s3 = inlined_call_operand.hbm [shape: f32[8,128], index: 3, kind: output, shape index: {}]  }
   0x1   :  { %10 = vsyncpa [#allocation7], 0 }
   0x2   :  { %11 = vsyncpa [#allocation5], 0  ;;  %s441_s12 = smov [#allocation3]   ;;  %s442_s14 = smov [#allocation6]  }
   0x3   :  { %s20_s13 = sshll.u32 %s441_s12, 4  ;;  %s29_s15 = sshll.u32 %s442_s14, 4  ;;  %s21_s13 = int_to_ptr.vmem [resolvable:$true] %s20_s13  ;;  %s469_s15 = int_to_ptr.vmem [resolvable:$true] %s29_s15 }
   0x4   :  { %s369_s18 = scalar_lea.hbm %s609_s1, 128 }
   0x5   :  { %p370_p0 = scmp.ne.s32.totalorder %s609_s1, %s369_s18  ;;  %p373_p1 = scmp.lt.u32.totalorder %s369_s18, %s609_s1 }
   0x7   :  { %p375_p2 = pnand %p373_p1, %p370_p0 }
   0x9   :  { %378 = shalt.err (!%p375_p2)
}
   0xa   :  { %s379_s23 = scalar_lea.vmem %s21_s13, 128  ;;  %p384_p4 = scmp.lt.s32.totalorder %s21_s13, %s21_s13 }
   0xb   :  { %p380_p3 = scmp.ne.s32.totalorder %s21_s13, %s379_s23  ;;  %p385_p5 = scmp.lt.s32.totalorder %s379_s23, %s379_s23 }
   0xd   :  { %p386_p6 = por %p385_p5, %p384_p4 }
   0xf   :  { %p387_p7 = pnand %p386_p6, %p380_p3 }
  0x11   :  { %390 = shalt.err (!%p387_p7)
}
  0x12   :  { %23 = dma.hbm_to_vmem [thread:$0]  %s609_s1, 128, %s21_s13, [#allocation4]  }
  0x13   :  { %s391_s28 = scalar_lea.hbm %s610_s2, 2048 }
  0x14   :  { %p392_p8 = scmp.ne.s32.totalorder %s610_s2, %s391_s28  ;;  %p395_p9 = scmp.lt.u32.totalorder %s391_s28, %s610_s2 }
  0x16   :  { %p397_p10 = pnand %p395_p9, %p392_p8 }
  0x18   :  { %400 = shalt.err (!%p397_p10)
}
  0x19   :  { %s401_s6 = scalar_lea.vmem %s469_s15, 2048  ;;  %p406_p12 = scmp.lt.s32.totalorder %s469_s15, %s469_s15 }
  0x1a   :  { %p402_p11 = scmp.ne.s32.totalorder %s469_s15, %s401_s6  ;;  %p407_p13 = scmp.lt.s32.totalorder %s401_s6, %s401_s6 }
  0x1c   :  { %p408_p0 = por %p407_p13, %p406_p12 }
  0x1e   :  { %p409_p1 = pnand %p408_p0, %p402_p11 }
  0x20   :  { %412 = shalt.err (!%p409_p1)
}
  0x21   :  { %s443_s1 = smov 128   ;;  %s444_s7 = smov 8  }
  0x22   :  { %35 = dma.hbm_to_vmem [thread:$0]  %s610_s2, 2048, %s469_s15, [#allocation7], %s443_s1, %s443_s1, %s444_s7  }
  0x23   :  { %435 = dma.done.wait [#allocation4], 128  }
  0x24   :  { %436 = vsyncadd [#allocation4], 4294967168 }
  0x25   :  { %437 = dma.done.wait [#allocation7], 2048  }
  0x26   :  { %438 = vsyncadd [#allocation7], 4294965248  ;;  %v500_v0 = vld [vmem:[#allocation6] sm:$0xff]  ;;  %v502_v1 = vld [vmem:[#allocation6 + $0x10] sm:$0xff]  ;;  %v445_v33 = vmov 0.0|0.0   ;;  %vm446_vm0 = vmmov 0  }
  0x27   :  { %v504_v2 = vld [vmem:[#allocation6 + $0x8] sm:$0xff]  ;;  %v68_v3 = vmul.f32 %v500_v0, %v500_v0  ;;  %v70_v4 = vmul.f32 %v502_v1, %v502_v1  ;;  %v510_v5 = vld [vmem:[#allocation6 + $0x18] sm:$0xff]  ;;  %v518_v9 = vld [vmem:[#allocation6 + $0x20] sm:$0xff]  ;;  %303 = vmatprep.subr.bf16.mxu0 %v445_v33  ;;  %v447_v35 = vmov 0.0   ;;  %s448_s11 = smov [#allocation8]  }
  0x28   :  { %v69_v6 = vmul.f32 %v504_v2, %v504_v2  ;;  %v71_v7 = vmul.f32 %v510_v5, %v510_v5  ;;  %v516_v8 = vld [vmem:[#allocation6 + $0x28] sm:$0xff]  ;;  %v72_v11 = vmul.f32 %v518_v9, %v518_v9  ;;  %v524_v12 = vld [vmem:[#allocation6 + $0x38] sm:$0xff]  ;;  %v526_v13 = vld [vmem:[#allocation6 + $0x30] sm:$0xff]  ;;  %300 = vmatprep.mubr.msk.f32.mxu0 %vm446_vm0, %v447_v35  ;;  %s241_s12 = sshll.u32 %s448_s11, 4  ;;  %s242_s12 = int_to_ptr.vmem [resolvable:$true] %s241_s12 }
  0x29   :  { %84 = vadd.xlane.f32.xlu0 %v68_v3  ;;  %88 = vadd.xlane.f32.xlu1 %v70_v4  ;;  %v73_v10 = vmul.f32 %v516_v8, %v516_v8  ;;  %v75_v14 = vmul.f32 %v524_v12, %v524_v12  ;;  %v74_v15 = vmul.f32 %v526_v13, %v526_v13  ;;  %v532_v16 = vld [vmem:[#allocation6 + $0x48] sm:$0xff]  ;;  %v534_v17 = vld [vmem:[#allocation6 + $0x40] sm:$0xff]  ;;  %v540_v20 = vld [vmem:[#allocation6 + $0x58] sm:$0xff]  ;;  %s413_s13 = scalar_lea.vmem %s242_s12, 128  ;;  %p418_p3 = scmp.lt.s32.totalorder %s242_s12, %s242_s12 }
  0x2a   :  { %v77_v18 = vmul.f32 %v532_v16, %v532_v16  ;;  %v76_v19 = vmul.f32 %v534_v17, %v534_v17  ;;  %v542_v21 = vld [vmem:[#allocation6 + $0x50] sm:$0xff]  ;;  %v79_v22 = vmul.f32 %v540_v20, %v540_v20  ;;  %v548_v24 = vld [vmem:[#allocation6 + $0x68] sm:$0xff]  ;;  %v550_v25 = vld [vmem:[#allocation6 + $0x60] sm:$0xff]  ;;  %p414_p2 = scmp.ne.s32.totalorder %s242_s12, %s413_s13  ;;  %p419_p4 = scmp.lt.s32.totalorder %s413_s13, %s413_s13 }
  0x2b   :  { %v78_v23 = vmul.f32 %v542_v21, %v542_v21  ;;  %v81_v26 = vmul.f32 %v548_v24, %v548_v24  ;;  %v80_v27 = vmul.f32 %v550_v25, %v550_v25  ;;  %v556_v28 = vld [vmem:[#allocation6 + $0x78] sm:$0xff]  ;;  %v558_v29 = vld [vmem:[#allocation6 + $0x70] sm:$0xff] }
  0x2c   :  { %v83_v30 = vmul.f32 %v556_v28, %v556_v28  ;;  %v82_v31 = vmul.f32 %v558_v29, %v558_v29  ;;  %v564_v32 = vld [vmem:[#allocation3] sm:$0xff]  ;;  %p420_p5 = por %p419_p4, %p418_p3 }
  0x2d   :  { %86 = vadd.xlane.f32.xlu0 %v69_v6  ;;  %90 = vadd.xlane.f32.xlu1 %v71_v7  ;;  %v60_v34 = vmul.f32 %v564_v32, %v564_v32 }
  0x2e   :  { %p421_p6 = pnand %p420_p5, %p414_p2 }
  0x31   :  { %94 = vadd.xlane.f32.xlu1 %v73_v10  ;;  %92 = vadd.xlane.f32.xlu0 %v72_v11 }
  0x35   :  { %98 = vadd.xlane.f32.xlu1 %v75_v14  ;;  %96 = vadd.xlane.f32.xlu0 %v74_v15 }
  0x39   :  { %102 = vadd.xlane.f32.xlu1 %v77_v18  ;;  %100 = vadd.xlane.f32.xlu0 %v76_v19 }
  0x3d   :  { %106 = vadd.xlane.f32.xlu1 %v79_v22  ;;  %104 = vadd.xlane.f32.xlu0 %v78_v23 }
  0x41   :  { %110 = vadd.xlane.f32.xlu1 %v81_v26  ;;  %108 = vadd.xlane.f32.xlu0 %v80_v27 }
  0x45   :  { %114 = vadd.xlane.f32.xlu1 %v83_v30  ;;  %112 = vadd.xlane.f32.xlu0 %v82_v31 }
  0x49   :  { %61 = vadd.xlane.f32.xlu0 %v60_v34 }
  0xb6   :  { %v85_v36 = vpop.xlane.xlu0 %84  ;;  %v89_v37 = vpop.xlane.xlu1 %88 }
  0xb7   :  { %v116_v38 = vmax.f32 %v85_v36, 1e-24  ;;  %v118_v42 = vmax.f32 %v89_v37, 1e-24 }
  0xb9   :  { %335 = vrsqrt.f32 %v116_v38 }
  0xba   :  { %v87_v39 = vpop.xlane.xlu0 %86  ;;  %v91_v40 = vpop.xlane.xlu1 %90 }
  0xbb   :  { %v117_v41 = vmax.f32 %v87_v39, 1e-24  ;;  %v119_v43 = vmax.f32 %v91_v40, 1e-24 }
  0xbd   :  { %337 = vrsqrt.f32 %v117_v41 }
  0xbe   :  { %v95_v44 = vpop.xlane.xlu1 %94  ;;  %339 = vrsqrt.f32 %v118_v42  ;;  %v93_v45 = vpop.xlane.xlu0 %92 }
  0xbf   :  { %341 = vrsqrt.f32 %v119_v43  ;;  %v121_v46 = vmax.f32 %v95_v44, 1e-24  ;;  %v120_v47 = vmax.f32 %v93_v45, 1e-24 }
  0xc1   :  { %343 = vrsqrt.f32 %v121_v46 }
  0xc2   :  { %345 = vrsqrt.f32 %v120_v47  ;;  %v99_v50 = vpop.xlane.xlu1 %98  ;;  %v97_v53 = vpop.xlane.xlu0 %96 }
  0xc3   :  { %v336_v48 = vpop.eup %335  ;;  %v123_v56 = vmax.f32 %v99_v50, 1e-24  ;;  %v122_v58 = vmax.f32 %v97_v53, 1e-24 }
  0xc4   :  { %v148_v51 = vmul.f32 %v336_v48, %v500_v0 }
  0xc5   :  { %347 = vrsqrt.f32 %v123_v56 }
  0xc6   :  { %349 = vrsqrt.f32 %v122_v58  ;;  %v103_v61 = vpop.xlane.xlu1 %102  ;;  %v101_v63 = vpop.xlane.xlu0 %100 }
  0xc7   :  { %v338_v49 = vpop.eup %337  ;;  %v125_v3 = vmax.f32 %v103_v61, 1e-24  ;;  %v124_v4 = vmax.f32 %v101_v63, 1e-24 }
  0xc8   :  { %v149_v52 = vmul.f32 %v338_v49, %v504_v2  ;;  %v340_v54 = vpop.eup %339 }
  0xc9   :  { %v342_v57 = vpop.eup %341  ;;  %v150_v59 = vmul.f32 %v340_v54, %v502_v1  ;;  %351 = vrsqrt.f32 %v125_v3 }
  0xca   :  { %v304_v55 = vpack.c.bf16 %v149_v52, %v148_v51  ;;  %v151_v60 = vmul.f32 %v342_v57, %v510_v5  ;;  %353 = vrsqrt.f32 %v124_v4  ;;  %v107_v1 = vpop.xlane.xlu1 %106  ;;  %v105_v11 = vpop.xlane.xlu0 %104 }
  0xcb   :  { %v344_v62 = vpop.eup %343  ;;  %v127_v15 = vmax.f32 %v107_v1, 1e-24  ;;  %v126_v18 = vmax.f32 %v105_v11, 1e-24 }
  0xcc   :  { %305 = vmatpush3.bf16.xpose.msra.mxu0 %v304_v55  ;;  %v346_v0 = vpop.eup %345  ;;  %v307_v2 = vpack.c.bf16 %v151_v60, %v150_v59  ;;  %v153_v7 = vmul.f32 %v344_v62, %v516_v8 }
  0xcd   :  { %306 = vmatprep.subr.bf16.mxu0 %v445_v33  ;;  %v152_v6 = vmul.f32 %v346_v0, %v518_v9  ;;  %355 = vrsqrt.f32 %v127_v15 }
  0xce   :  { %357 = vrsqrt.f32 %v126_v18  ;;  %v111_v8 = vpop.xlane.xlu1 %110  ;;  %v109_v26 = vpop.xlane.xlu0 %108 }
  0xcf   :  { %v348_v10 = vpop.eup %347  ;;  %v310_v5 = vpack.c.bf16 %v153_v7, %v152_v6  ;;  %v129_v30 = vmax.f32 %v111_v8, 1e-24  ;;  %v128_v31 = vmax.f32 %v109_v26, 1e-24 }
  0xd0   :  { %v350_v14 = vpop.eup %349  ;;  %v155_v22 = vmul.f32 %v348_v10, %v524_v12 }
  0xd1   :  { %v154_v19 = vmul.f32 %v350_v14, %v526_v13  ;;  %359 = vrsqrt.f32 %v129_v30 }
  0xd2   :  { %361 = vrsqrt.f32 %v128_v31  ;;  %v115_v12 = vpop.xlane.xlu1 %114  ;;  %v113_v37 = vpop.xlane.xlu0 %112 }
  0xd3   :  { %v352_v9 = vpop.eup %351  ;;  %v313_v23 = vpack.c.bf16 %v155_v22, %v154_v19  ;;  %v131_v39 = vmax.f32 %v115_v12, 1e-24  ;;  %v130_v40 = vmax.f32 %v113_v37, 1e-24 }
  0xd4   :  { %308 = vmatpush3.bf16.xpose.msra.mxu0 %v307_v2  ;;  %v354_v27 = vpop.eup %353  ;;  %v157_v35 = vmul.f32 %v352_v9, %v532_v16 }
  0xd5   :  { %309 = vmatprep.subr.bf16.mxu0 %v445_v33  ;;  %v156_v34 = vmul.f32 %v354_v27, %v534_v17  ;;  %363 = vrsqrt.f32 %v131_v39 }
  0xd6   :  { %365 = vrsqrt.f32 %v130_v40  ;;  %v62_v16 = vpop.xlane.xlu0 %61 }
  0xd7   :  { %v356_v13 = vpop.eup %355  ;;  %v316_v36 = vpack.c.bf16 %v157_v35, %v156_v34  ;;  %v63_v45 = vmax.f32 %v62_v16, 1e-24 }
  0xd8   :  { %v358_v38 = vpop.eup %357  ;;  %v159_v42 = vmul.f32 %v356_v13, %v540_v20 }
  0xd9   :  { %v158_v41 = vmul.f32 %v358_v38, %v542_v21  ;;  %367 = vrsqrt.f32 %v63_v45 }
  0xdb   :  { %v360_v17 = vpop.eup %359  ;;  %v319_v43 = vpack.c.bf16 %v159_v42, %v158_v41 }
  0xdc   :  { %311 = vmatpush3.bf16.xpose.msra.mxu0 %v310_v5  ;;  %v362_v44 = vpop.eup %361  ;;  %v161_v47 = vmul.f32 %v360_v17, %v548_v24 }
  0xdd   :  { %312 = vmatprep.subr.bf16.mxu0 %v445_v33  ;;  %v160_v46 = vmul.f32 %v362_v44, %v550_v25  ;;  %v65_v25 = vstv %s608_s0 }
  0xdf   :  { %v364_v21 = vpop.eup %363  ;;  %v322_v48 = vpack.c.bf16 %v161_v47, %v160_v46 }
  0xe0   :  { %v366_v20 = vpop.eup %365  ;;  %v163_v50 = vmul.f32 %v364_v21, %v556_v28 }
  0xe1   :  { %v162_v49 = vmul.f32 %v366_v20, %v558_v29 }
  0xe3   :  { %v368_v51 = vpop.eup %367  ;;  %v325_v52 = vpack.c.bf16 %v163_v50, %v162_v49 }
  0xe4   :  { %314 = vmatpush3.bf16.xpose.msra.mxu0 %v313_v23  ;;  %v66_v24 = vmul.f32 %v368_v51, %v65_v25 }
  0xe5   :  { %315 = vmatprep.subr.bf16.mxu0 %v445_v33 }
  0xe6   :  { %v67_v53 = vmul.f32 %v66_v24, %v564_v32 }
  0xec   :  { %317 = vmatpush3.bf16.xpose.msra.mxu0 %v316_v36 }
  0xed   :  { %318 = vmatprep.subr.bf16.mxu0 %v445_v33 }
  0xf4   :  { %320 = vmatpush3.bf16.xpose.msra.mxu0 %v319_v43 }
  0xf5   :  { %321 = vmatprep.subr.bf16.mxu0 %v445_v33 }
  0xfc   :  { %323 = vmatpush3.bf16.xpose.msra.mxu0 %v322_v48 }
  0xfd   :  { %324 = vmatprep.subr.bf16.mxu0 %v445_v33 }
 0x104   :  { %326 = vmatpush3.bf16.xpose.msra.mxu0 %v325_v52 }
 0x10b   :  { %301 = vmatmul.mubr.f32.vlgmr.msra.gmra.mrb[0].mxu0 %v67_v53 }
 0x1de   :  { %v230_v54 = vpop.f32.mrb[0].mxu0 }
 0x1df   :  { %234 = vst [vmem:[#allocation8] sm:$0xff] %v230_v54  ;;  %v302_v29 = vpop.f32.mrb[1].mxu0 }
 0x1e0   :  { %424 = shalt.err (!%p421_p6)
}
 0x1e1   :  { %s425_s15 = scalar_lea.hbm %s611_s3, 128 }
 0x1e2   :  { %p426_p7 = scmp.ne.s32.totalorder %s611_s3, %s425_s15  ;;  %p429_p8 = scmp.lt.u32.totalorder %s425_s15, %s611_s3 }
 0x1e4   :  { %p431_p9 = pnand %p429_p8, %p426_p7 }
 0x1e6   :  { %434 = shalt.err (!%p431_p9)
}
 0x1e7   :  { %244 = dma.vmem_to_hbm [thread:$0]  %s242_s12, 128, %s611_s3, [#allocation5]  }
 0x1e8   :  { %439 = dma.done.wait [#allocation5], 128  }
 0x1e9   :  { %440 = vsyncadd [#allocation5], 4294967168 }
 0x1ea   :  { %248 = vsyncpa [#allocation4], 1 }
 0x1eb   :  { %249 = vsyncpa [#allocation7], 1 }
 0x1ec   :  { %250 = vsyncpa [#allocation5], 1 }

</bundles_post_ra>
